<compile_context>
chip_gen: v7x
topology: tpu7x:2x2x1
jax: 0.10.0
libtpu: 0.0.40
codegen_flags: <defaults>
</compile_context>

<pallas_src>
import functools

import jax
import jax.numpy as jnp
from jax.experimental import pallas as pl
from jax.experimental.pallas import tpu as pltpu


# ----------------------------------------------------------------------------
# Kernel
# ----------------------------------------------------------------------------
def encoder_kernel(x_ref, w1_ref, b1_ref, w2_ref, b2_ref, w3_ref, b3_ref,
                   out_ref):
    # x arrives f32; cast to the MXU operand dtype in-kernel (VPU, hidden
    # under the MXU) instead of paying a separate XLA cast + extra HBM bytes.
    x = x_ref[...].astype(w1_ref.dtype)

    # Layer 1: (tb, D) @ (D, H) -> f32 accumulate, f32 epilogue.
    h = jnp.dot(x, w1_ref[...], preferred_element_type=jnp.float32)
    h = jnp.maximum(h + b1_ref[...], 0.0)

    # Layer 2: (tb, H) @ (H, H).
    h = jnp.dot(h.astype(w2_ref.dtype), w2_ref[...],
                preferred_element_type=jnp.float32)
    h = jnp.maximum(h + b2_ref[...], 0.0)

    # Layer 3: (tb, H) @ (H, 2M).
    y = jnp.dot(h.astype(w3_ref.dtype), w3_ref[...],
                preferred_element_type=jnp.float32)
    y = y + b3_ref[...]

    # Single lane-contiguous output tile: columns [:M] = mu, [M:] = exp(lv/2).
    M = out_ref.shape[-1] // 2
    if M % 128 == 0:
        # Lane-tile-aligned halves: slices are free, exp only on the std half
        # (half the EUP transcendentals, no iota/compare/select on the VPU).
        out_ref[:, :M] = y[:, :M].astype(out_ref.dtype)
        out_ref[:, M:] = jnp.exp(y[:, M:] * 0.5).astype(out_ref.dtype)
    else:
        # Non-lane-aligned M (demo shapes): one pass over the combined tile
        # with a lane-index select; avoids sub-vreg slicing / partial stores.
        col = jax.lax.broadcasted_iota(jnp.int32, y.shape, dimension=1)
        out_ref[...] = jnp.where(col >= M, jnp.exp(y * 0.5), y).astype(
            out_ref.dtype)


# ----------------------------------------------------------------------------
# One-time host-side configuration (all cached)
# ----------------------------------------------------------------------------
@functools.lru_cache(maxsize=None)
def _is_multi_tc_chip():
    """True on chips with >1 TensorCore per chip (v7x): a 'parallel' grid axis
    is then sharded across cores, so an even >=2-step batch split pays off."""
    try:
        kind = jax.devices()[0].device_kind.lower()
    except Exception:  # noqa: BLE001 - no device info; assume single TC
        return False
    return "v7" in kind


@functools.lru_cache(maxsize=None)
def _single_buffer_supported():
    """One-time capability probe (NOT the real kernel): does this jax build
    accept/lower pipeline_mode=pl.Buffered(1) on a grid-invariant input?"""
    if not hasattr(pl, "Buffered"):
        return False

    def _k(c_ref, o_ref):
        o_ref[...] = c_ref[...] * 2.0

    try:
        f = pl.pallas_call(
            _k,
            grid=(2,),
            in_specs=[pl.BlockSpec((8, 128), lambda i: (0, 0),
                                   pipeline_mode=pl.Buffered(1))],
            out_specs=pl.BlockSpec((8, 128), lambda i: (i, 0)),
            out_shape=jax.ShapeDtypeStruct((16, 128), jnp.float32),
        )
        jax.block_until_ready(f(jnp.ones((8, 128), jnp.float32)))
        return True
    except Exception:  # noqa: BLE001 - capability probe only
        return False


def _round_up(v, m):
    return -(-v // m) * m


def _pick_tb(B, multi_tc):
    """Batch tile. When the batch is tiled, round to a multiple of 16 (bf16
    MXU-operand sublane packing). Single-TC chips (v5e/v6e): large cap (1024)
    to amortize the ~0.35us/step overhead. Multi-TC (v7x): force an even
    number of >=2 grid steps so both TensorCores get equal batch tiles."""
    if B <= 16:
        return B  # single step, whole batch (block dim == full array dim)
    cap = 256 if multi_tc else 1024
    tb = min(cap, _round_up(B, 16))
    if multi_tc:
        steps = max(2, pl.cdiv(B, tb))
        if steps % 2:
            steps += 1
        tb = _round_up(pl.cdiv(B, steps), 16)
    return tb


def _vmem_limit_bytes(D, H, M2, tb, single_buffer, multi_tc):
    """Explicit VMEM budget when the resident weight set outgrows the ~32 MiB
    scoped default; None (compiler default) otherwise."""
    wbuf = 1 if single_buffer else 2
    weights = (D * H + H * H + H * M2) * 2 * wbuf        # bf16 weights
    biases = (H + H + M2) * 4 * wbuf                     # f32 biases
    io = 2 * tb * D * 4 + 2 * tb * M2 * 4                # double-buffered x/out
    need = weights + biases + io + (4 << 20)             # headroom for temps
    if need <= (32 << 20):
        return None
    physical_cap = (56 << 20) if multi_tc else (100 << 20)  # v7x 64MiB / 128MiB
    return int(min(need, physical_cap))


@functools.lru_cache(maxsize=None)
def _build_encoder_call(B, D, H, M2, tb, single_buffer, vmem_limit):
    """Build the pallas_call once per static configuration."""
    grid = (pl.cdiv(B, tb),)

    def const_spec(shape):
        # Grid-invariant block (weights / biases): same tile every step.
        idx = lambda i, _shape=shape: (0,) * len(_shape)
        if single_buffer:
            # Resident once in VMEM; default 2x buffering is wasted on it.
            return pl.BlockSpec(shape, idx, pipeline_mode=pl.Buffered(1))
        return pl.BlockSpec(shape, idx)

    in_specs = [
        pl.BlockSpec((tb, D), lambda i: (i, 0)),   # x
        const_spec((D, H)),                        # W1
        const_spec((1, H)),                        # b1
        const_spec((H, H)),                        # W2
        const_spec((1, H)),                        # b2
        const_spec((H, M2)),                       # W3
        const_spec((1, M2)),                       # b3
    ]
    out_specs = pl.BlockSpec((tb, M2), lambda i: (i, 0))  # [mu | std]

    cp_kwargs = dict(dimension_semantics=("parallel",))
    if vmem_limit is not None:
        cp_kwargs["vmem_limit_bytes"] = vmem_limit

    return pl.pallas_call(
        encoder_kernel,
        grid=grid,
        in_specs=in_specs,
        out_specs=out_specs,
        out_shape=jax.ShapeDtypeStruct((B, M2), jnp.float32),
        compiler_params=pltpu.CompilerParams(**cp_kwargs),
    )


@functools.lru_cache(maxsize=None)
def _jitted_forward(B, D, H, M2, tb, single_buffer, vmem_limit):
    call = _build_encoder_call(B, D, H, M2, tb, single_buffer, vmem_limit)
    M = M2 // 2

    @jax.jit
    def fwd(x, w1, b1, w2, b2, w3, b3):
        y = call(x, w1, b1, w2, b2, w3, b3)
        return y[:, :M], y[:, M:]   # cheap lane-aligned-at-scale split

    return fwd


# ----------------------------------------------------------------------------
# Public API
# ----------------------------------------------------------------------------
def prepare_params(params, mxu_dtype=jnp.bfloat16):
    """One-time parameter prep: weights -> MXU operand dtype (default bf16;
    pass jnp.float32 to opt out of the precision change), biases -> f32 rows."""
    w1, b1, w2, b2, w3, b3 = params
    cw = lambda w: w.astype(mxu_dtype)
    cb = lambda b: b.reshape(1, -1).astype(jnp.float32)
    return (cw(w1), cb(b1), cw(w2), cb(b2), cw(w3), cb(b3))


def encoder_forward(x, params, *, tb=None):
    """VAE encoder forward. x: (B, D) float32; params from prepare_params.
    Returns (mu, std), each (B, M) float32."""
    w1, b1, w2, b2, w3, b3 = params
    B, D = x.shape
    H = w1.shape[1]
    M2 = w3.shape[1]

    multi_tc = _is_multi_tc_chip()
    if tb is None:
        tb = _pick_tb(B, multi_tc)
    single_buffer = _single_buffer_supported()
    vmem_limit = _vmem_limit_bytes(D, H, M2, tb, single_buffer, multi_tc)

    fwd = _jitted_forward(B, D, H, M2, tb, single_buffer, vmem_limit)
    return fwd(x, w1, b1, w2, b2, w3, b3)


def init_params(key, D, H, M, dtype=jnp.float32):
    """Deterministic parameter init (PyTorch-Linear-like uniform bounds).
    Weights are stored (in_features, out_features): x @ W + b == nn.Linear."""
    ks = jax.random.split(key, 6)

    def lin(kw, kb, fan_in, fan_out):
        bound = 1.0 / jnp.sqrt(fan_in)
        w = jax.random.uniform(kw, (fan_in, fan_out), dtype, -bound, bound)
        b = jax.random.uniform(kb, (1, fan_out), dtype, -bound, bound)
        return w, b

    w1, b1 = lin(ks[0], ks[1], D, H)
    w2, b2 = lin(ks[2], ks[3], H, H)
    w3, b3 = lin(ks[4], ks[5], H, 2 * M)
    return (w1, b1, w2, b2, w3, b3)


def encoder_reference(x, params, mxu_dtype=None):
    """Pure-JAX reference mirroring the PyTorch forward. If mxu_dtype is
    given, mimics the kernel's reduced-precision-operand / f32-acc matmuls."""
    w1, b1, w2, b2, w3, b3 = params
    cast = (lambda a: a.astype(mxu_dtype)) if mxu_dtype is not None else (lambda a: a)
    h = jnp.maximum(
        jnp.dot(cast(x), cast(w1), preferred_element_type=jnp.float32) + b1, 0.0)
    h = jnp.maximum(
        jnp.dot(cast(h), cast(w2), preferred_element_type=jnp.float32) + b2, 0.0)
    y = jnp.dot(cast(h), cast(w3), preferred_element_type=jnp.float32) + b3
    M = w3.shape[1] // 2
    y = y.reshape(-1, 2, M)
    return y[:, 0, :], jnp.exp(y[:, 1, :] / 2.0)


if __name__ == "__main__":
    # Small shapes implied by the module: batch=8, D=32, H=64, M=16.
    B, D, H, M = 8, 32, 64, 16

    key = jax.random.PRNGKey(0)
    kx, kp = jax.random.split(key)
    x = jax.random.normal(kx, (B, D), dtype=jnp.float32)
    raw_params = init_params(kp, D, H, M)
    params = prepare_params(raw_params)          # one-time bf16 weight cast

    mu, std = encoder_forward(x, params)
    mu, std = jax.block_until_ready((mu, std))
    assert mu.shape == (B, M) and std.shape == (B, M)

    # Tight check against a reference using the same bf16-operand matmuls.
    mu_bf, std_bf = encoder_reference(x, raw_params, mxu_dtype=jnp.bfloat16)
    assert jnp.allclose(mu, mu_bf, atol=1e-3, rtol=1e-3)
    assert jnp.allclose(std, std_bf, atol=1e-3, rtol=1e-3)

    # Loose check against the full-f32 reference (bf16 operand rounding only).
    mu_f32, std_f32 = encoder_reference(x, raw_params)
    assert jnp.allclose(mu, mu_f32, atol=5e-2, rtol=5e-2)
    assert jnp.allclose(std, std_f32, atol=5e-2, rtol=5e-2)

    # Second call exercises the cached pallas_call / jit path (no rebuild).
    mu2, std2 = jax.block_until_ready(encoder_forward(x, params))
    assert jnp.allclose(mu, mu2) and jnp.allclose(std, std2)

    print("KERNEL_OK")
</pallas_src>

<mosaic_0001>
module attributes {stable_mosaic.version = 11 : i64} {
  func.func @_k(%arg0: i32, %arg1: memref<8x128xf32, #tpu.memory_space<vmem>>, %arg2: memref<8x128xf32, #tpu.memory_space<vmem>>) attributes {dimension_semantics = [#tpu.dimension_semantics<arbitrary>], iteration_bounds = array<i64: 2>, scalar_prefetch = 0 : i64, scratch_operands = 0 : i64, tpu.core_type = #tpu.core_type<tc>, window_params = [{pipeline_mode = #tpu.pipeline_mode<synchronous>, transform_indices = @transform_0, window_bounds = array<i64: 8, 128>}, {transform_indices = @transform_1, window_bounds = array<i64: 8, 128>}]} {
    %c0 = arith.constant 0 : index
    %c0_0 = arith.constant 0 : index
    %0 = vector.load %arg1[%c0, %c0_0] : memref<8x128xf32, #tpu.memory_space<vmem>>, vector<8x128xf32>
    %cst = arith.constant 2.000000e+00 : f32
    %1 = vector.broadcast %cst : f32 to vector<8x128xf32>
    %2 = arith.mulf %0, %1 : vector<8x128xf32>
    %c0_1 = arith.constant 0 : index
    %c0_2 = arith.constant 0 : index
    %3 = vector.load %arg2[%c0_1, %c0_2] : memref<8x128xf32, #tpu.memory_space<vmem>>, vector<8x128xf32>
    tpu.vector_store %arg2[%c0_1, %c0_2], %2 {strides = array<i32>} : memref<8x128xf32, #tpu.memory_space<vmem>>, vector<8x128xf32>,
    return
  }
  func.func @transform_0(%arg0: i32) -> (i32, i32) {
    %c0_i32 = arith.constant 0 : i32
    %c0_i32_0 = arith.constant 0 : i32
    %c0_i32_1 = arith.constant 0 : i32
    return %c0_i32, %c0_i32_0 : i32, i32
  }
  func.func @transform_1(%arg0: i32) -> (i32, i32) {
    %c0_i32 = arith.constant 0 : i32
    %c0_i32_0 = arith.constant 0 : i32
    return %arg0, %c0_i32 : i32, i32
  }
}

module attributes {stable_mosaic.version = 11 : i64} {
  func.func @encoder_kernel(%arg0: i32, %arg1: memref<8x32xf32, #tpu.memory_space<vmem>>, %arg2: memref<32x64xbf16, #tpu.memory_space<vmem>>, %arg3: memref<1x64xf32, #tpu.memory_space<vmem>>, %arg4: memref<64x64xbf16, #tpu.memory_space<vmem>>, %arg5: memref<1x64xf32, #tpu.memory_space<vmem>>, %arg6: memref<64x32xbf16, #tpu.memory_space<vmem>>, %arg7: memref<1x32xf32, #tpu.memory_space<vmem>>, %arg8: memref<8x32xf32, #tpu.memory_space<vmem>>) attributes {dimension_semantics = [#tpu.dimension_semantics<parallel>], iteration_bounds = array<i64: 1>, scalar_prefetch = 0 : i64, scratch_operands = 0 : i64, tpu.core_type = #tpu.core_type<tc>, window_params = [{transform_indices = @transform_0, window_bounds = array<i64: 8, 32>}, {pipeline_mode = #tpu.pipeline_mode<synchronous>, transform_indices = @transform_1, window_bounds = array<i64: 32, 64>}, {pipeline_mode = #tpu.pipeline_mode<synchronous>, transform_indices = @transform_2, window_bounds = array<i64: 1, 64>}, {pipeline_mode = #tpu.pipeline_mode<synchronous>, transform_indices = @transform_3, window_bounds = array<i64: 64, 64>}, {pipeline_mode = #tpu.pipeline_mode<synchronous>, transform_indices = @transform_4, window_bounds = array<i64: 1, 64>}, {pipeline_mode = #tpu.pipeline_mode<synchronous>, transform_indices = @transform_5, window_bounds = array<i64: 64, 32>}, {pipeline_mode = #tpu.pipeline_mode<synchronous>, transform_indices = @transform_6, window_bounds = array<i64: 1, 32>}, {transform_indices = @transform_7, window_bounds = array<i64: 8, 32>}]} {
    %c0 = arith.constant 0 : index
    %c0_0 = arith.constant 0 : index
    %0 = vector.load %arg1[%c0, %c0_0] : memref<8x32xf32, #tpu.memory_space<vmem>>, vector<8x32xf32>
    %1 = arith.truncf %0 : vector<8x32xf32> to vector<8x32xbf16>
    %c0_1 = arith.constant 0 : index
    %c0_2 = arith.constant 0 : index
    %2 = vector.load %arg2[%c0_1, %c0_2] : memref<32x64xbf16, #tpu.memory_space<vmem>>, vector<32x64xbf16>
    %cst = arith.constant dense<0.000000e+00> : vector<8x64xf32>
    %3 = tpu.matmul %1, %2, %cst {dimension_numbers = #tpu.dot_dimension_numbers<[1], [0], [0], [1], [0, 0, 1, 1], [], []>} : vector<8x32xbf16>, vector<32x64xbf16>, vector<8x64xf32> -> vector<8x64xf32>
    %c0_3 = arith.constant 0 : index
    %c0_4 = arith.constant 0 : index
    %4 = vector.load %arg3[%c0_3, %c0_4] : memref<1x64xf32, #tpu.memory_space<vmem>>, vector<1x64xf32>
    %5 = vector.broadcast %4 : vector<1x64xf32> to vector<8x64xf32>
    %6 = arith.addf %3, %5 : vector<8x64xf32>
    %cst_5 = arith.constant 0.000000e+00 : f32
    %7 = vector.broadcast %cst_5 : f32 to vector<8x64xf32>
    %8 = arith.maximumf %6, %7 : vector<8x64xf32>
    %9 = arith.truncf %8 : vector<8x64xf32> to vector<8x64xbf16>
    %c0_6 = arith.constant 0 : index
    %c0_7 = arith.constant 0 : index
    %10 = vector.load %arg4[%c0_6, %c0_7] : memref<64x64xbf16, #tpu.memory_space<vmem>>, vector<64x64xbf16>
    %cst_8 = arith.constant dense<0.000000e+00> : vector<8x64xf32>
    %11 = tpu.matmul %9, %10, %cst_8 {dimension_numbers = #tpu.dot_dimension_numbers<[1], [0], [0], [1], [0, 0, 1, 1], [], []>} : vector<8x64xbf16>, vector<64x64xbf16>, vector<8x64xf32> -> vector<8x64xf32>
    %c0_9 = arith.constant 0 : index
    %c0_10 = arith.constant 0 : index
    %12 = vector.load %arg5[%c0_9, %c0_10] : memref<1x64xf32, #tpu.memory_space<vmem>>, vector<1x64xf32>
    %13 = vector.broadcast %12 : vector<1x64xf32> to vector<8x64xf32>
    %14 = arith.addf %11, %13 : vector<8x64xf32>
    %cst_11 = arith.constant 0.000000e+00 : f32
    %15 = vector.broadcast %cst_11 : f32 to vector<8x64xf32>
    %16 = arith.maximumf %14, %15 : vector<8x64xf32>
    %17 = arith.truncf %16 : vector<8x64xf32> to vector<8x64xbf16>
    %c0_12 = arith.constant 0 : index
    %c0_13 = arith.constant 0 : index
    %18 = vector.load %arg6[%c0_12, %c0_13] : memref<64x32xbf16, #tpu.memory_space<vmem>>, vector<64x32xbf16>
    %cst_14 = arith.constant dense<0.000000e+00> : vector<8x32xf32>
    %19 = tpu.matmul %17, %18, %cst_14 {dimension_numbers = #tpu.dot_dimension_numbers<[1], [0], [0], [1], [0, 0, 1, 1], [], []>} : vector<8x64xbf16>, vector<64x32xbf16>, vector<8x32xf32> -> vector<8x32xf32>
    %c0_15 = arith.constant 0 : index
    %c0_16 = arith.constant 0 : index
    %20 = vector.load %arg7[%c0_15, %c0_16] : memref<1x32xf32, #tpu.memory_space<vmem>>, vector<1x32xf32>
    %21 = vector.broadcast %20 : vector<1x32xf32> to vector<8x32xf32>
    %22 = arith.addf %19, %21 : vector<8x32xf32>
    %23 = tpu.iota {dimensions = array<i32: 1>} : vector<8x32xi32>
    %c16_i32 = arith.constant 16 : i32
    %24 = vector.broadcast %c16_i32 : i32 to vector<8x32xi32>
    %25 = arith.cmpi sge, %23, %24 : vector<8x32xi32>
    %cst_17 = arith.constant 5.000000e-01 : f32
    %26 = vector.broadcast %cst_17 : f32 to vector<8x32xf32>
    %27 = arith.mulf %22, %26 : vector<8x32xf32>
    %28 = math.exp %27 : vector<8x32xf32>
    %29 = arith.select %25, %28, %22 : vector<8x32xi1>, vector<8x32xf32>
    %c0_18 = arith.constant 0 : index
    %c0_19 = arith.constant 0 : index
    %30 = vector.load %arg8[%c0_18, %c0_19] : memref<8x32xf32, #tpu.memory_space<vmem>>, vector<8x32xf32>
    tpu.vector_store %arg8[%c0_18, %c0_19], %29 {strides = array<i32>} : memref<8x32xf32, #tpu.memory_space<vmem>>, vector<8x32xf32>,
    return
  }
  func.func @transform_0(%arg0: i32) -> (i32, i32) {
    %c0_i32 = arith.constant 0 : i32
    %c0_i32_0 = arith.constant 0 : i32
    return %arg0, %c0_i32 : i32, i32
  }
  func.func @transform_1(%arg0: i32) -> (i32, i32) {
    %c0_i32 = arith.constant 0 : i32
    %c0_i32_0 = arith.constant 0 : i32
    %c0_i32_1 = arith.constant 0 : i32
    return %c0_i32, %c0_i32_0 : i32, i32
  }
  func.func @transform_2(%arg0: i32) -> (i32, i32) {
    %c0_i32 = arith.constant 0 : i32
    %c0_i32_0 = arith.constant 0 : i32
    %c0_i32_1 = arith.constant 0 : i32
    return %c0_i32, %c0_i32_0 : i32, i32
  }
  func.func @transform_3(%arg0: i32) -> (i32, i32) {
    %c0_i32 = arith.constant 0 : i32
    %c0_i32_0 = arith.constant 0 : i32
    %c0_i32_1 = arith.constant 0 : i32
    return %c0_i32, %c0_i32_0 : i32, i32
  }
  func.func @transform_4(%arg0: i32) -> (i32, i32) {
    %c0_i32 = arith.constant 0 : i32
    %c0_i32_0 = arith.constant 0 : i32
    %c0_i32_1 = arith.constant 0 : i32
    return %c0_i32, %c0_i32_0 : i32, i32
  }
  func.func @transform_5(%arg0: i32) -> (i32, i32) {
    %c0_i32 = arith.constant 0 : i32
    %c0_i32_0 = arith.constant 0 : i32
    %c0_i32_1 = arith.constant 0 : i32
    return %c0_i32, %c0_i32_0 : i32, i32
  }
  func.func @transform_6(%arg0: i32) -> (i32, i32) {
    %c0_i32 = arith.constant 0 : i32
    %c0_i32_0 = arith.constant 0 : i32
    %c0_i32_1 = arith.constant 0 : i32
    return %c0_i32, %c0_i32_0 : i32, i32
  }
  func.func @transform_7(%arg0: i32) -> (i32, i32) {
    %c0_i32 = arith.constant 0 : i32
    %c0_i32_0 = arith.constant 0 : i32
    return %arg0, %c0_i32 : i32, i32
  }
}

</mosaic_0001>

<bundles_post_ra>
// kernel: tpu_custom_call.1
= control target key start
LH: loop header
LB: loop body
LE: loop exit
PB: predicated region body
PF: predicated region fallthrough
CT: control target
= control target key end

     0   :  { %6 = vsyncpa [#allocation3], 0  ;;  %s482_s0 = inlined_call_operand.hbm [shape: f32[8,128], index: 0, kind: input, shape index: {}]   ;;  %s483_s1 = inlined_call_operand.hbm [shape: f32[16,128], index: 1, kind: output, shape index: {}]  }
   0x1   :  { %7 = vsyncpa [#allocation4], 0 }
   0x2   :  { %9 = vsyncpa [#allocation4 + $0x1], 0  ;;  %s352_s6 = smov 0   ;;  %s354_s7 = smov 0  }
   0x3   :  { %s356_s8 = smov 0   ;;  %s358_s9 = smov 0  }
   0x4 LB: > { %s373_s10 = sadd.s32 4294967295, %s338_s9   ;;  %s184_s11 = sadd.s32 4294967294, %s338_s9   ;;  %s338_s9 = sphi %s358_s9, %s499_s9   ;;  %s334_s8 = sphi %s356_s8, %s498_s8   ;;  %s330_s7 = sphi %s354_s7, %s497_s7   ;;  %s326_s6 = sphi %s352_s6, %s496_s6  }
   0x5   : > { %s377_s12 = sadd.s32 1, %s338_s9   ;;  %s43_s13 = sadd.s32 1, %s334_s8 }
   0x6   : > { %s40_s14 = ssub.s32 %s338_s9, %s377_s12  ;;  %p53_p0 = scmp.ne.s32.totalorder %s334_s8, %s330_s7 }
   0x7   : > { %p41_p1 = scmp.eq.s32.totalorder %s40_s14, 0  ;;  %p54_p2 = scmp.eq.s32.totalorder %s373_s10, 1 }
   0x8   : > { %p59_p3 = scmp.ne.s32.totalorder %s330_s7, %s326_s6  ;;  %p60_p4 = scmp.eq.s32.totalorder %s184_s11, 1 }
   0x9   : > { %s388_s15 = scalar_select %p41_p1, %s334_s8, %s43_s13  }
   0xa   : > { %p390_p5 = por %p54_p2, %p53_p0  ;;  %p394_p6 = por %p60_p4, %p59_p3 }
   0xb   : > { %p185_p7 = scmp.ge.s32.totalorder %s338_s9, 1  ;;  %p67_p8 = scmp.lt.s32.totalorder %s338_s9, 3 }
   0xc   : > { %s487_s16 = scalar_select %p390_p5, 1, 0 }
   0xd   : > { %s488_s17 = scalar_select %p394_p6, 1, 0 }
   0xe   : > { %p484_p9 = scmp.eq.s32.totalorder %s373_s10, 0  ;;  %p401_p10 = pnand %p185_p7, %p67_p8 }
   0xf   : > { %s340_s19 = smov [#allocation2]   ;;  %s244_s24 = scalar_lea.hbm %s482_s0, 128 }
  0x10   : > { %s489_s18 = scalar_select %p401_p10, 1, 0 }
  0x11   : > { %s80_s20 = sshll.u32 %s340_s19, 4  ;;  %p200_p11 = pneg %p401_p10  ;;  %s81_s20 = int_to_ptr.vmem [resolvable:$true] %s80_s20 }
  0x12   : > { %p245_p13 = scmp.ne.s32.totalorder %s482_s0, %s244_s24  ;;  %p251_p3 = scmp.lt.u32.totalorder %s244_s24, %s482_s0 }
  0x13   : > { %p409_p12 = pnand %p484_p9, %p200_p11 }
  0x15   : > { %p246_p0 = pneg %p409_p12 }
  0x17   : > { %p247_p1 = pnand %p246_p0, %p245_p13 }
  0x19   : > { %p248_p2 = pneg %p247_p1 }
  0x1b   : > { %p253_p4 = pnand %p251_p3, %p248_p2 }
  0x1d   : > { %256 = shalt.err (!%p253_p4)
}
  0x1e   : > { %s257_s29 = scalar_lea.vmem %s81_s20, 128  ;;  %p265_p9 = scmp.lt.s32.totalorder %s81_s20, %s81_s20 }
  0x1f   : > { %p258_p7 = scmp.ne.s32.totalorder %s81_s20, %s257_s29  ;;  %p266_p6 = scmp.lt.s32.totalorder %s257_s29, %s257_s29 }
  0x21   : > { %p260_p8 = pnand %p258_p7, %p246_p0  ;;  %p267_p5 = por %p266_p6, %p265_p9 }
  0x23   : > { %p261_p11 = pneg %p260_p8 }
  0x25   : > { %p268_p10 = pnand %p267_p5, %p261_p11 }
  0x27   : > { %271 = shalt.err (!%p268_p10)
}
  0x28   : > { %203 = dma.hbm_to_vmem [thread:$0]  (!%p409_p12), %s482_s0, 128, %s81_s20, [#allocation3]  }
  0x29   : > { %p491_p13 = scmp.ne.s32.totalorder %s489_s18, 0 }
  0x2a   : > { %p492_p1 = scmp.eq.s32.totalorder (!%p491_p13), %s373_s10, 0 }
  0x2b   : > { %93 = sbr.rel (%p491_p13) target bundleno = 77 (0x4d), region = 24 }
  0x32   : > { %317 = dma.done.wait (%p492_p1), [#allocation3], 128   ;;  %p493_p0 = pmov %p492_p1 }
  0x33   : > { %s105_s3 = sand.u32 1, %s330_s7   ;;  %s191_s13 = sshll.u32 %s373_s10, 7  ;;  %v108_v0 = vld [vmem:[#allocation2] sm:$0xff] }
  0x34   : > { %319 = vsyncadd (%p493_p0), [#allocation3], 4294967168  ;;  %s189_s4 = sshll.u32 %s105_s3, 3  ;;  %v109_v1 = vmul.f32 2.0, %v108_v0  ;;  %s442_s19 = scalar_lea.hbm %s483_s1, %s191_s13 }
  0x35   : > { %s107_s5 = scalar_lea.vmem [#allocation5], %s189_s4  ;;  %s112_s20 = scalar_lea.sflag [#allocation4], %s105_s3 }
  0x36   : > { %s125_s11 = sshll.u32 %s107_s5, 4  ;;  %110 = vst [vmem:[%s107_s5] sm:$0xff] %v109_v1  ;;  %p494_p6 = scmp.ne.s32.totalorder %s487_s16, 0  ;;  %s437_s11 = int_to_ptr.vmem [resolvable:$true] %s125_s11 }
  0x37   : > { %s272_s21 = scalar_lea.vmem %s437_s11, 128  ;;  %s341_s10 = smov [#allocation5]  }
  0x38   : > { %p273_p5 = scmp.ne.s32.totalorder %s437_s11, %s272_s21  ;;  %s276_s22 = sshll.u32 %s341_s10, 4  ;;  %s277_s22 = int_to_ptr.vmem [resolvable:$false] %s276_s22 }
  0x39   : > { %s278_s23 = scalar_lea.vmem %s277_s22, 256  ;;  %p279_p12 = scmp.lt.s32.totalorder %s437_s11, %s277_s22 }
  0x3a   : > { %p274_p9 = pnand %p273_p5, %p494_p6  ;;  %p280_p2 = scmp.lt.s32.totalorder %s278_s23, %s272_s21 }
  0x3c   : > { %p275_p10 = pneg %p274_p9  ;;  %p281_p3 = por %p280_p2, %p279_p12 }
  0x3e   : > { %p282_p4 = pnand %p281_p3, %p275_p10 }
  0x40   : > { %285 = shalt.err (!%p282_p4)
}
  0x41   : > { %s286_s24 = scalar_lea.hbm %s442_s19, 128  ;;  %s290_s27 = scalar_lea.hbm %s483_s1, 256 }
  0x42   : > { %p287_p7 = scmp.ne.s32.totalorder %s442_s19, %s286_s24  ;;  %p291_p13 = scmp.lt.u32.totalorder %s442_s19, %s483_s1 }
  0x43   : > { %p292_p1 = scmp.lt.u32.totalorder %s290_s27, %s286_s24  ;;  %p294_p5 = scmp.lt.u32.totalorder %s286_s24, %s442_s19 }
  0x44   : > { %p288_p8 = pnand %p287_p7, %p494_p6 }
  0x45   : > { %p293_p0 = por %p292_p1, %p291_p13 }
  0x46   : > { %p289_p11 = pneg %p288_p8 }
  0x47   : > { %p295_p9 = por %p294_p5, %p293_p0 }
  0x49   : > { %p296_p10 = pnand %p295_p9, %p289_p11 }
  0x4b   : > { %299 = shalt.err (!%p296_p10)
}
  0x4c   : > { %198 = dma.vmem_to_hbm [thread:$0]  (%p494_p6), %s437_s11, 128, %s442_s19, %s112_s20  }
  0x4d PF: > { %p210_p12 = scmp.ge.s32.totalorder %s338_s9, 2  ;;  %s137_s30 = sand.u32 1, %s326_s6  }
  0x4e   : > { %p495_p2 = scmp.ne.s32.totalorder %s488_s17, 0  ;;  %s138_s2 = scalar_lea.sflag [#allocation4], %s137_s30 }
  0x50   : > { %p205_p3 = pnand %p210_p12, %p495_p2 }
  0x52   : > { %321 = dma.done.wait (!%p205_p3), %s138_s2, 128  }
  0x53   : > { %323 = vsyncadd (!%p205_p3), %s138_s2, 4294967168  ;;  %p12_p4 = scmp.ge.s32.totalorder %s377_s12, 4   ;;  %s496_s6 = smov %s330_s7 }
  0x54   : > { %s497_s7 = smov %s334_s8  ;;  %s498_s8 = smov %s388_s15 }
  0x55   : > { %s499_s9 = smov %s377_s12  ;;  %14 = sbr.rel (!%p12_p4) target bundleno = 4 (0x4), region = 61 }
  0x5c   :  { %143 = vsyncpa [#allocation3], 1 }
  0x5d   :  { %145 = vsyncpa [#allocation3 + $0x1], 1 }
  0x5e   :  { %146 = vsyncpa [#allocation4], 1 }
  0x5f   :  { %148 = vsyncpa [#allocation4 + $0x1], 1 }

// kernel: fwd.1
= control target key start
LH: loop header
LB: loop body
LE: loop exit
PB: predicated region body
PF: predicated region fallthrough
CT: control target
= control target key end

     0   :  { %12 = vsyncpa [#allocation3], 0  ;;  %s390_s24 = smov [#allocation2]   ;;  %s494_s0 = inlined_call_operand.hbm [shape: f32[8,32], index: 0, kind: input, shape index: {}]   ;;  %s495_s1 = inlined_call_operand.vmem [shape: bf16[32,64], index: 1, kind: input, shape index: {}]   ;;  %s496_s2 = inlined_call_operand.vmem [shape: f32[1,64], index: 2, kind: input, shape index: {}]   ;;  %s497_s3 = inlined_call_operand.vmem [shape: bf16[64,64], index: 3, kind: input, shape index: {}]   ;;  %s498_s4 = inlined_call_operand.vmem [shape: f32[1,64], index: 4, kind: input, shape index: {}]   ;;  %s499_s5 = inlined_call_operand.vmem [shape: bf16[64,32], index: 5, kind: input, shape index: {}]   ;;  %s500_s6 = inlined_call_operand.vmem [shape: f32[1,32], index: 6, kind: input, shape index: {}]   ;;  %s501_s7 = inlined_call_operand.vmem [shape: f32[8,32], index: 7, kind: output, shape index: {}]  }
   0x1   :  { %s19_s25 = sshll.u32 %s390_s24, 4  ;;  %s366_s28 = scalar_lea.hbm %s494_s0, 128  ;;  %s20_s25 = int_to_ptr.vmem [resolvable:$true] %s19_s25 }
   0x2   :  { %p367_p0 = scmp.ne.s32.totalorder %s494_s0, %s366_s28  ;;  %p370_p1 = scmp.lt.u32.totalorder %s366_s28, %s494_s0 }
   0x4   :  { %p372_p2 = pnand %p370_p1, %p367_p0 }
   0x6   :  { %375 = shalt.err (!%p372_p2)
}
   0x7   :  { %s376_s10 = scalar_lea.vmem %s20_s25, 128  ;;  %p381_p4 = scmp.lt.s32.totalorder %s20_s25, %s20_s25 }
   0x8   :  { %p377_p3 = scmp.ne.s32.totalorder %s20_s25, %s376_s10  ;;  %p382_p5 = scmp.lt.s32.totalorder %s376_s10, %s376_s10 }
   0xa   :  { %p383_p6 = por %p382_p5, %p381_p4 }
   0xc   :  { %p384_p7 = pnand %p383_p6, %p377_p3 }
   0xe   :  { %387 = shalt.err (!%p384_p7)
}
   0xf   :  { %22 = dma.hbm_to_vmem [thread:$0]  %s494_s0, 128, %s20_s25, [#allocation3]  }
  0x10   :  { %388 = dma.done.wait [#allocation3], 128  }
  0x11   :  { %389 = vsyncadd [#allocation3], 4294967168  ;;  %v391_v0 = vmov 0.0   ;;  %vm392_vm0 = vmmov 0   ;;  %v354_v1 = vld [vmem:[%s495_s1] sm:$0xff]   ;;  %v355_v2 = vld [vmem:[%s495_s1 + $0x8] sm:$0xff]   ;;  %v277_v37 = vlaneseq }
  0x12   :  { %319 = vmatprep.subr.bf16.mxu0 %v391_v0  ;;  %323 = vmatprep.mubr.msk.bf16.mxu0 %vm392_vm0, %v391_v0  ;;  %v39_v3 = vld [vmem:[#allocation2] sm:$0xff]  ;;  %vm64_vm1 = vcmask 261120   ;;  %v357_v5 = vld [vmem:[%s497_s3 + $0x8] sm:$0xff]   ;;  %v358_v7 = vld [vmem:[%s497_s3 + $0x10] sm:$0xff]   ;;  %vm149_vm2 = vcmask 523264  }
  0x13   :  { %327 = vmatprep.subr.bf16.mxu1 %v391_v0  ;;  %335 = vmatprep.mubr.msk.bf16.mxu1 %vm392_vm0, %v391_v0  ;;  %v356_v4 = vld [vmem:[%s497_s3] sm:$0xff]   ;;  %v40_v6 = vpack.c.bf16 %v39_v3, %v39_v3  ;;  %v359_v8 = vld [vmem:[%s497_s3 + $0x18] sm:$0xff]   ;;  %v361_v10 = vld [vmem:[%s499_s5 + $0x8] sm:$0xff]   ;;  %v278_v38 = vand.u32 127, %v277_v37 }
  0x14   :  { %320 = vmatpush3.bf16.msra.mxu0 %v354_v1  ;;  %328 = vmatpush3.bf16.msra.mxu1 %v356_v4  ;;  %v360_v9 = vld [vmem:[%s499_s5] sm:$0xff]   ;;  %v362_v19 = vld [vmem:[%s499_s5 + $0x10] sm:$0xff]   ;;  %v363_v20 = vld [vmem:[%s499_s5 + $0x18] sm:$0xff]  }
  0x15   :  { %321 = vmatprep.subr.bf16.mxu0 %v391_v0  ;;  %329 = vmatprep.subr.bf16.mxu1 %v391_v0  ;;  %v290_v11 = vld [vmem:[%s496_s2] ss:$0 sm:$0xff]  ;;  %vm279_vm3 = vcmp.ge.s32.totalorder %v278_v38, 16 }
  0x16   :  { %v294_v21 = vld [vmem:[%s498_s4] ss:$0 sm:$0xff] }
  0x17   :  { %v300_v29 = vld [vmem:[%s500_s6] ss:$0 sm:$0xff] }
  0x18   :  { %322 = vmatpush3.bf16.msra.mxu0 %v355_v2  ;;  %330 = vmatpush3.bf16.msra.mxu1 %v357_v5 }
  0x19   :  { %339 = vmatprep.subr.bf16.mxu0 %v391_v0  ;;  %331 = vmatprep.subr.bf16.mxu1 %v391_v0 }
  0x1b   :  { %324 = vmatmul.mubr.msk.bf16.vlgmr.msra.gmra.mrb[0].mxu0 %vm64_vm1, %v40_v6 }
  0x1c   :  { %347 = vmatprep.mubr.msk.bf16.mxu0 %vm392_vm0, %v391_v0  ;;  %332 = vmatpush3.bf16.msra.mxu1 %v358_v7 }
  0x1d   :  { %333 = vmatprep.subr.bf16.mxu1 %v391_v0  ;;  %340 = vmatpush3.bf16.msra.mxu0 %v360_v9 }
  0x1e   :  { %341 = vmatprep.subr.bf16.mxu0 %v391_v0 }
  0x20   :  { %334 = vmatpush3.bf16.msra.mxu1 %v359_v8 }
  0x21   :  { %342 = vmatpush3.bf16.msra.mxu0 %v361_v10 }
  0x22   :  { %343 = vmatprep.subr.bf16.mxu0 %v391_v0 }
  0x25   :  { %344 = vmatpush3.bf16.msra.mxu0 %v362_v19 }
  0x26   :  { %345 = vmatprep.subr.bf16.mxu0 %v391_v0 }
  0x29   :  { %346 = vmatpush3.bf16.msra.mxu0 %v363_v20 }
  0xee   :  { %v102_v12 = vpop.f32.mrb[0].mxu0 }
  0xef   :  { %v103_v13 = vadd.f32 %v290_v11, %v102_v12  ;;  %v325_v14 = vpop.f32.mrb[1].mxu0 }
  0xf0   :  { %v105_v15 = vpop.f32.mrb[2].mxu0 }
  0xf1   :  { %v108_v16 = vmax.f32 %v103_v13, 0.0  ;;  %v326_v17 = vpop.f32.mrb[3].mxu0 }
  0xf3   :  { %v109_v18 = vpack.c.bf16 %v108_v16, %v108_v16 }
  0xf5   :  { %336 = vmatmul.mubr.msk.bf16.vlgmr.msra.gmra.mrb[0].mxu1 %vm149_vm2, %v109_v18 }
 0x1c8   :  { %v187_v22 = vpop.f32.mrb[0].mxu1 }
 0x1c9   :  { %v188_v23 = vadd.f32 %v294_v21, %v187_v22  ;;  %v337_v24 = vpop.f32.mrb[1].mxu1 }
 0x1ca   :  { %v190_v25 = vpop.f32.mrb[2].mxu1 }
 0x1cb   :  { %v193_v26 = vmax.f32 %v188_v23, 0.0  ;;  %v338_v27 = vpop.f32.mrb[3].mxu1 }
 0x1cd   :  { %v194_v28 = vpack.c.bf16 %v193_v26, %v193_v26 }
 0x1cf   :  { %348 = vmatmul.mubr.msk.bf16.vlgmr.msra.gmra.mrb[4].mxu0 %vm149_vm2, %v194_v28 }
 0x2a2   :  { %v271_v30 = vpop.f32.mrb[4].mxu0 }
 0x2a3   :  { %v272_v31 = vadd.f32 %v300_v29, %v271_v30  ;;  %v349_v32 = vpop.f32.mrb[5].mxu0 }
 0x2a4   :  { %v274_v33 = vpop.f32.mrb[6].mxu0 }
 0x2a5   :  { %v280_v34 = vmul.f32 0.5, %v272_v31  ;;  %v350_v35 = vpop.f32.mrb[7].mxu0 }
 0x2a7   :  { %v281_v36 = vmul.f32 1.442695, %v280_v34 }
 0x2a9   :  { %364 = vpow2.f32 %v281_v36 }
 0x2b3   :  { %v365_v39 = vpop.eup %364 }
 0x2b4   :  { %v283_v40 = vsel %vm279_vm3, %v365_v39, %v272_v31 }
 0x2b5   :  { %284 = vst.msk [vmem:[%s501_s7] sm:$0xff] %vm64_vm1, %v283_v40 }
 0x2b6   :  { %289 = vsyncpa [#allocation3], 1 }

</bundles_post_ra>
